<compile_context>
chip_gen: v5e
topology: v5e:2x2
jax: 0.10.0
libtpu: 0.0.40
codegen_flags: <defaults>
</compile_context>

<pallas_src>
import jax
import jax.numpy as jnp
from jax.experimental import pallas as pl
from jax.experimental.pallas import tpu as pltpu


def nest_mlp_kernel(x_ref, w1_ref, b1_ref, w2_ref, b2_ref, w3_ref, b3_ref, o_ref):
    # Three *dependent* MXU matmuls are the critical path; bias-add / ReLU VPU
    # work rides in spare bundle slots under the MXU and is effectively free.
    # All matmul operands are cast to the weight dtype (bf16) so every layer
    # stays on the fast bf16 MXU path; accumulation stays in f32.
    x = x_ref[...].astype(w1_ref.dtype)

    # net: Linear(20,64) -> ReLU
    h1 = jnp.dot(x, w1_ref[...], preferred_element_type=jnp.float32)
    h1 = jnp.maximum(h1 + b1_ref[...], 0.0)          # f32 accumulator path

    # net: Linear(64,32) -> ReLU
    h2 = jnp.dot(h1.astype(w2_ref.dtype), w2_ref[...],
                 preferred_element_type=jnp.float32)
    h2 = jnp.maximum(h2 + b2_ref[...], 0.0)

    # outer linear: Linear(32,16), no activation
    y = jnp.dot(h2.astype(w3_ref.dtype), w3_ref[...],
                preferred_element_type=jnp.float32)
    o_ref[...] = (y + b3_ref[...]).astype(o_ref.dtype)


def _round_up(n, m):
    return ((n + m - 1) // m) * m


def nest_mlp(x, w1, b1, w2, b2, w3, b3, *, tile_b=1024,
             matmul_dtype=jnp.bfloat16):
    B, in_dim = x.shape
    hid1, hid2, out_dim = w1.shape[1], w2.shape[1], w3.shape[1]

    # Matmul operands in bf16 (3x fewer MXU passes); biases stay f32 so the
    # bias-add / ReLU runs in the f32 accumulator.
    w1c = w1.astype(matmul_dtype)
    w2c = w2.astype(matmul_dtype)
    w3c = w3.astype(matmul_dtype)

    # Batch tile: big enough to amortize the ~0.35 us/step floor and the MXU
    # weight reloads, never bigger than the (8-rounded) batch, and capped at
    # ~ceil(B/2) for large B so the "parallel" grid has >= 2 steps to shard
    # over v7x's 2 TensorCores (kept >= 256 rows/step for v5e/v6e MRF drain).
    tile_b = max(8, min(tile_b, _round_up(B, 8)))
    if B > 512:
        tile_b = min(tile_b, max(256, _round_up(pl.cdiv(B, 2), 8)))
    b_pad = _round_up(B, tile_b)
    x_p = jnp.pad(x, ((0, b_pad - B), (0, 0))) if b_pad != B else x

    grid = (b_pad // tile_b,)

    dsize = jnp.dtype(x.dtype).itemsize
    weight_bytes = sum(int(a.size) * jnp.dtype(a.dtype).itemsize
                       for a in (w1c, b1, w2c, b2, w3c, b3))
    cost = pl.CostEstimate(
        flops=2 * b_pad * (in_dim * hid1 + hid1 * hid2 + hid2 * out_dim),
        transcendentals=0,
        bytes_accessed=b_pad * (in_dim + out_dim) * dsize + weight_bytes,
    )

    # Constant index_map -> block stays resident in VMEM across grid steps.
    const = lambda shape: pl.BlockSpec(shape, lambda i: (0,) * len(shape))

    out = pl.pallas_call(
        nest_mlp_kernel,
        out_shape=jax.ShapeDtypeStruct((b_pad, out_dim), x.dtype),
        grid=grid,
        in_specs=[
            pl.BlockSpec((tile_b, in_dim), lambda i: (i, 0)),   # x: batch-tiled
            const(w1c.shape), const(b1.shape),
            const(w2c.shape), const(b2.shape),
            const(w3c.shape), const(b3.shape),
        ],
        out_specs=pl.BlockSpec((tile_b, out_dim), lambda i: (i, 0)),
        compiler_params=pltpu.CompilerParams(
            dimension_semantics=("parallel",)),   # 2x on v7x dual-TC; no-op v5e/v6e
        cost_estimate=cost,
    )(x_p, w1c, b1, w2c, b2, w3c, b3)

    return out[:B] if b_pad != B else out


def init_linear(key, in_f, out_f, dtype=jnp.float32):
    # Deterministic init matching nn.Linear's default U(-1/sqrt(in), 1/sqrt(in)).
    kw, kb = jax.random.split(key)
    bound = 1.0 / jnp.sqrt(jnp.float32(in_f))
    # Stored as (in, out): transpose of PyTorch's (out, in) weight layout.
    w = jax.random.uniform(kw, (in_f, out_f), dtype, -bound, bound)
    b = jax.random.uniform(kb, (1, out_f), dtype, -bound, bound)
    return w, b


def _ref(x, w1, b1, w2, b2, w3, b3, matmul_dtype=jnp.bfloat16):
    # Pure-JAX reference mirroring the kernel's bf16-operand / f32-accumulate path.
    def lin(a, w, b):
        return jnp.dot(a.astype(matmul_dtype), w.astype(matmul_dtype),
                       preferred_element_type=jnp.float32) + b
    h = jnp.maximum(lin(x, w1, b1), 0.0)
    h = jnp.maximum(lin(h, w2, b2), 0.0)
    return lin(h, w3, b3)


if __name__ == "__main__":
    key = jax.random.PRNGKey(0)
    kx, k1, k2, k3, kbig = jax.random.split(key, 5)

    w1, b1 = init_linear(k1, 20, 64)
    w2, b2 = init_linear(k2, 64, 32)
    w3, b3 = init_linear(k3, 32, 16)

    # X = torch.rand(2, 20)  ->  uniform [0, 1)
    x = jax.random.uniform(kx, (2, 20), jnp.float32)
    out = jax.block_until_ready(nest_mlp(x, w1, b1, w2, b2, w3, b3))
    assert out.shape == (2, 16)
    assert jnp.allclose(out, _ref(x, w1, b1, w2, b2, w3, b3), atol=1e-3, rtol=1e-3)

    # Larger, non-tile-multiple batch: exercises batch tiling, padding, and the
    # >=2-grid-step guard (tile_b -> 512, grid=(2,)).
    xb = jax.random.uniform(kbig, (1000, 20), jnp.float32)
    outb = jax.block_until_ready(nest_mlp(xb, w1, b1, w2, b2, w3, b3))
    assert outb.shape == (1000, 16)
    assert jnp.allclose(outb, _ref(xb, w1, b1, w2, b2, w3, b3), atol=1e-3, rtol=1e-3)

    print("KERNEL_OK")
</pallas_src>

<mosaic_0001>
module attributes {stable_mosaic.version = 11 : i64} {
  func.func @nest_mlp_kernel(%arg0: i32, %arg1: memref<8x20xf32, #tpu.memory_space<vmem>>, %arg2: memref<20x64xbf16, #tpu.memory_space<vmem>>, %arg3: memref<1x64xf32, #tpu.memory_space<vmem>>, %arg4: memref<64x32xbf16, #tpu.memory_space<vmem>>, %arg5: memref<1x32xf32, #tpu.memory_space<vmem>>, %arg6: memref<32x16xbf16, #tpu.memory_space<vmem>>, %arg7: memref<1x16xf32, #tpu.memory_space<vmem>>, %arg8: memref<8x16xf32, #tpu.memory_space<vmem>>) attributes {dimension_semantics = [#tpu.dimension_semantics<parallel>], iteration_bounds = array<i64: 1>, scalar_prefetch = 0 : i64, scratch_operands = 0 : i64, tpu.core_type = #tpu.core_type<tc>, window_params = [{transform_indices = @transform_0, window_bounds = array<i64: 8, 20>}, {pipeline_mode = #tpu.pipeline_mode<synchronous>, transform_indices = @transform_1, window_bounds = array<i64: 20, 64>}, {pipeline_mode = #tpu.pipeline_mode<synchronous>, transform_indices = @transform_2, window_bounds = array<i64: 1, 64>}, {pipeline_mode = #tpu.pipeline_mode<synchronous>, transform_indices = @transform_3, window_bounds = array<i64: 64, 32>}, {pipeline_mode = #tpu.pipeline_mode<synchronous>, transform_indices = @transform_4, window_bounds = array<i64: 1, 32>}, {pipeline_mode = #tpu.pipeline_mode<synchronous>, transform_indices = @transform_5, window_bounds = array<i64: 32, 16>}, {pipeline_mode = #tpu.pipeline_mode<synchronous>, transform_indices = @transform_6, window_bounds = array<i64: 1, 16>}, {transform_indices = @transform_7, window_bounds = array<i64: 8, 16>}]} {
    %c0 = arith.constant 0 : index
    %c0_0 = arith.constant 0 : index
    %0 = vector.load %arg1[%c0, %c0_0] : memref<8x20xf32, #tpu.memory_space<vmem>>, vector<8x20xf32>
    %1 = arith.truncf %0 : vector<8x20xf32> to vector<8x20xbf16>
    %c0_1 = arith.constant 0 : index
    %c0_2 = arith.constant 0 : index
    %2 = vector.load %arg2[%c0_1, %c0_2] : memref<20x64xbf16, #tpu.memory_space<vmem>>, vector<20x64xbf16>
    %cst = arith.constant dense<0.000000e+00> : vector<8x64xf32>
    %3 = tpu.matmul %1, %2, %cst {dimension_numbers = #tpu.dot_dimension_numbers<[1], [0], [0], [1], [0, 0, 1, 1], [], []>} : vector<8x20xbf16>, vector<20x64xbf16>, vector<8x64xf32> -> vector<8x64xf32>
    %c0_3 = arith.constant 0 : index
    %c0_4 = arith.constant 0 : index
    %4 = vector.load %arg3[%c0_3, %c0_4] : memref<1x64xf32, #tpu.memory_space<vmem>>, vector<1x64xf32>
    %5 = vector.broadcast %4 : vector<1x64xf32> to vector<8x64xf32>
    %6 = arith.addf %3, %5 : vector<8x64xf32>
    %cst_5 = arith.constant 0.000000e+00 : f32
    %7 = vector.broadcast %cst_5 : f32 to vector<8x64xf32>
    %8 = arith.maximumf %6, %7 : vector<8x64xf32>
    %9 = arith.truncf %8 : vector<8x64xf32> to vector<8x64xbf16>
    %c0_6 = arith.constant 0 : index
    %c0_7 = arith.constant 0 : index
    %10 = vector.load %arg4[%c0_6, %c0_7] : memref<64x32xbf16, #tpu.memory_space<vmem>>, vector<64x32xbf16>
    %cst_8 = arith.constant dense<0.000000e+00> : vector<8x32xf32>
    %11 = tpu.matmul %9, %10, %cst_8 {dimension_numbers = #tpu.dot_dimension_numbers<[1], [0], [0], [1], [0, 0, 1, 1], [], []>} : vector<8x64xbf16>, vector<64x32xbf16>, vector<8x32xf32> -> vector<8x32xf32>
    %c0_9 = arith.constant 0 : index
    %c0_10 = arith.constant 0 : index
    %12 = vector.load %arg5[%c0_9, %c0_10] : memref<1x32xf32, #tpu.memory_space<vmem>>, vector<1x32xf32>
    %13 = vector.broadcast %12 : vector<1x32xf32> to vector<8x32xf32>
    %14 = arith.addf %11, %13 : vector<8x32xf32>
    %cst_11 = arith.constant 0.000000e+00 : f32
    %15 = vector.broadcast %cst_11 : f32 to vector<8x32xf32>
    %16 = arith.maximumf %14, %15 : vector<8x32xf32>
    %17 = arith.truncf %16 : vector<8x32xf32> to vector<8x32xbf16>
    %c0_12 = arith.constant 0 : index
    %c0_13 = arith.constant 0 : index
    %18 = vector.load %arg6[%c0_12, %c0_13] : memref<32x16xbf16, #tpu.memory_space<vmem>>, vector<32x16xbf16>
    %cst_14 = arith.constant dense<0.000000e+00> : vector<8x16xf32>
    %19 = tpu.matmul %17, %18, %cst_14 {dimension_numbers = #tpu.dot_dimension_numbers<[1], [0], [0], [1], [0, 0, 1, 1], [], []>} : vector<8x32xbf16>, vector<32x16xbf16>, vector<8x16xf32> -> vector<8x16xf32>
    %c0_15 = arith.constant 0 : index
    %c0_16 = arith.constant 0 : index
    %20 = vector.load %arg7[%c0_15, %c0_16] : memref<1x16xf32, #tpu.memory_space<vmem>>, vector<1x16xf32>
    %21 = vector.broadcast %20 : vector<1x16xf32> to vector<8x16xf32>
    %22 = arith.addf %19, %21 : vector<8x16xf32>
    %c0_17 = arith.constant 0 : index
    %c0_18 = arith.constant 0 : index
    %23 = vector.load %arg8[%c0_17, %c0_18] : memref<8x16xf32, #tpu.memory_space<vmem>>, vector<8x16xf32>
    tpu.vector_store %arg8[%c0_17, %c0_18], %22 {strides = array<i32>} : memref<8x16xf32, #tpu.memory_space<vmem>>, vector<8x16xf32>,
    return
  }
  func.func @transform_0(%arg0: i32) -> (i32, i32) {
    %c0_i32 = arith.constant 0 : i32
    %c0_i32_0 = arith.constant 0 : i32
    return %arg0, %c0_i32 : i32, i32
  }
  func.func @transform_1(%arg0: i32) -> (i32, i32) {
    %c0_i32 = arith.constant 0 : i32
    %c0_i32_0 = arith.constant 0 : i32
    %c0_i32_1 = arith.constant 0 : i32
    return %c0_i32, %c0_i32_0 : i32, i32
  }
  func.func @transform_2(%arg0: i32) -> (i32, i32) {
    %c0_i32 = arith.constant 0 : i32
    %c0_i32_0 = arith.constant 0 : i32
    %c0_i32_1 = arith.constant 0 : i32
    return %c0_i32, %c0_i32_0 : i32, i32
  }
  func.func @transform_3(%arg0: i32) -> (i32, i32) {
    %c0_i32 = arith.constant 0 : i32
    %c0_i32_0 = arith.constant 0 : i32
    %c0_i32_1 = arith.constant 0 : i32
    return %c0_i32, %c0_i32_0 : i32, i32
  }
  func.func @transform_4(%arg0: i32) -> (i32, i32) {
    %c0_i32 = arith.constant 0 : i32
    %c0_i32_0 = arith.constant 0 : i32
    %c0_i32_1 = arith.constant 0 : i32
    return %c0_i32, %c0_i32_0 : i32, i32
  }
  func.func @transform_5(%arg0: i32) -> (i32, i32) {
    %c0_i32 = arith.constant 0 : i32
    %c0_i32_0 = arith.constant 0 : i32
    %c0_i32_1 = arith.constant 0 : i32
    return %c0_i32, %c0_i32_0 : i32, i32
  }
  func.func @transform_6(%arg0: i32) -> (i32, i32) {
    %c0_i32 = arith.constant 0 : i32
    %c0_i32_0 = arith.constant 0 : i32
    %c0_i32_1 = arith.constant 0 : i32
    return %c0_i32, %c0_i32_0 : i32, i32
  }
  func.func @transform_7(%arg0: i32) -> (i32, i32) {
    %c0_i32 = arith.constant 0 : i32
    %c0_i32_0 = arith.constant 0 : i32
    return %arg0, %c0_i32 : i32, i32
  }
}

</mosaic_0001>

<bundles_post_ra>
// kernel: tpu_custom_call.1
= control target key start
LH: loop header
LB: loop body
LE: loop exit
PB: predicated region body
PF: predicated region fallthrough
CT: control target
= control target key end

     0   :  { %vm50_vm0 = vcmask 1041408   ;;  %s327_s0 = inlined_call_operand.vmem [shape: f32[8,20], index: 0, kind: input, shape index: {}]   ;;  %s328_s1 = inlined_call_operand.vmem [shape: bf16[20,64], index: 1, kind: input, shape index: {}]   ;;  %s329_s2 = inlined_call_operand.vmem [shape: f32[1,64], index: 2, kind: input, shape index: {}]   ;;  %s330_s3 = inlined_call_operand.vmem [shape: bf16[64,32], index: 3, kind: input, shape index: {}]   ;;  %s331_s4 = inlined_call_operand.vmem [shape: f32[1,32], index: 4, kind: input, shape index: {}]   ;;  %s332_s5 = inlined_call_operand.vmem [shape: bf16[32,16], index: 5, kind: input, shape index: {}]   ;;  %s333_s6 = inlined_call_operand.vmem [shape: f32[1,16], index: 6, kind: input, shape index: {}]   ;;  %s334_s7 = inlined_call_operand.hbm [shape: f32[8,16], index: 7, kind: output, shape index: {}]  }
   0x1   :  { %v32_v0 = vld [vmem:[%s328_s1 + $0x8] sm:$0x3]  ;;  %v214_v2 = vld [vmem:[%s330_s3 + $0x18] sm:$0xff]  ;;  %v213_v4 = vld [vmem:[%s330_s3 + $0x10] sm:$0xff] }
   0x2   :  { %v42_v1 = vunpack.c.l.b16 %v32_v0  ;;  %113 = vmatpush.bf16.msra.mxu1 %v214_v2 }
   0x4   :  { %v44_v3 = vpack.c.b16 %v42_v1, %v42_v1 }
   0x5   :  { %12 = vsyncpa [#allocation3], 0  ;;  %v210_v6 = vld [vmem:[%s328_s1] sm:$0xff]  ;;  %vm46_vm1 = vcmask 162816   ;;  %v212_v9 = vld [vmem:[%s330_s3 + $0x8] sm:$0xff]  ;;  %vm105_vm2 = vcmask 523264  }
   0x6   :  { %v52_v5 = vsel %vm50_vm0, %v44_v3, 0  ;;  %v28_v7 = vld [vmem:[%s327_s0] sm:$0xff]  ;;  %114 = vmatpush.bf16.msra.mxu1 %v213_v4  ;;  %v216_v17 = vld [vmem:[%s332_s5 + $0x8] sm:$0xff]  ;;  %vm144_vm3 = vcmask 261120   ;;  %s247_s21 = smov [#allocation2]   ;;  %s170_s24 = sshll.u32 %s334_s7, 4  ;;  %s171_s24 = int_to_ptr.hbm [resolvable:$true] %s170_s24 }
   0x7   :  { %60 = vmatpush.bf16.msra.mxu0 %v52_v5  ;;  %v29_v8 = vpack.c.bf16 %v28_v7, %v28_v7  ;;  %v211_v10 = vld [vmem:[%s330_s3] sm:$0xff]  ;;  %154 = vmatpush.bf16.msra.mxu2 %v216_v17  ;;  %s168_s22 = sshll.u32 %s247_s21, 4  ;;  %vm161_vm4 = vcmask 130048   ;;  %s169_s22 = int_to_ptr.vmem [resolvable:$true] %s168_s22 }
   0x8   :  { %v218_v11 = vld [vmem:[%s329_s2] ss:$0 sm:$0xff] }
   0x9   :  { %v215_v18 = vld [vmem:[%s332_s5] sm:$0xff] }
   0xa   :  { %115 = vmatpush.bf16.msra.mxu1 %v212_v9  ;;  %v219_v19 = vld [vmem:[%s331_s4] ss:$0 sm:$0xff] }
   0xb   :  { %61 = vmatpush.bf16.msra.mxu0 %v210_v6  ;;  %155 = vmatpush.bf16.msra.mxu2 %v215_v18  ;;  %v220_v25 = vld [vmem:[%s333_s6] ss:$0 sm:$0xff] }
   0xe   :  { %183 = vmatmul.msk.bf16.vlgmr.msra.gmra.mxu0 %vm46_vm1, %v29_v8  ;;  %116 = vmatpush.bf16.msra.mxu1 %v211_v10 }
  0x8b   :  { %v63_v12 = vpop.f32.mrf.mxu0 }
  0x8c   :  { %v64_v13 = vadd.f32 %v218_v11, %v63_v12 }
  0x8e   :  { %v67_v14 = vmax.f32 %v64_v13, 0.0 }
  0x90   :  { %v68_v15 = vpack.c.bf16 %v67_v14, %v67_v14 }
  0x92   :  { %200 = vmatmul.msk.bf16.vlgmr.msra.gmra.mxu1 %vm105_vm2, %v68_v15 }
  0x93   :  { %v65_v16 = vpop.f32.mrf.mxu0 }
 0x10f   :  { %v118_v20 = vpop.f32.mrf.mxu1 }
 0x110   :  { %v119_v21 = vadd.f32 %v219_v19, %v118_v20 }
 0x112   :  { %v122_v22 = vmax.f32 %v119_v21, 0.0 }
 0x114   :  { %v123_v23 = vpack.c.bf16 %v122_v22, %v122_v22 }
 0x116   :  { %209 = vmatmul.msk.bf16.vlgmr.msra.gmra.mxu2 %vm144_vm3, %v123_v23 }
 0x117   :  { %v120_v24 = vpop.f32.mrf.mxu1 }
 0x199   :  { %v157_v26 = vpop.f32.mrf.mxu2 }
 0x19a   :  { %v158_v27 = vadd.f32 %v220_v25, %v157_v26 }
 0x19c   :  { %162 = vst.msk [vmem:[#allocation2] sm:$0xff] %vm161_vm4, %v158_v27 }
 0x19d   :  { %173 = dma.vmem_to_hbm [thread:$0]  %s169_s22, 128, %s171_s24, [#allocation3]  }
 0x1a1   :  { %v159_v28 = vpop.f32.mrf.mxu2 }
 0x1a2   :  { %245 = dma.done.wait [#allocation3], 128  }
 0x1a3   :  { %246 = vsyncadd [#allocation3], 4294967168 }
 0x1a4   :  { %178 = vsyncpa [#allocation3], 1 }

</bundles_post_ra>
